<compile_context>
chip_gen: v5e
topology: v5e:2x2
jax: 0.10.0
libtpu: 0.0.40
codegen_flags: <defaults>
</compile_context>

<pallas_src>
import functools

import jax
import jax.numpy as jnp
from jax.experimental import pallas as pl
from jax.experimental.pallas import tpu as pltpu


def _round_up(x, m):
    return (x + m - 1) // m * m


def _vmem_budget_bytes():
    """~0.8x of physical VMEM for the current generation (conservative fallback)."""
    phys = 64 << 20  # v7x-safe fallback
    try:
        info = pltpu.get_tpu_info()
        cap = getattr(info, "vmem_capacity_bytes", None)
        if cap:
            phys = int(cap)
    except Exception:
        pass
    return int(phys * 0.8)


def _choose_tiles(n, num_rel, num_groups, f_in_p, f_out_p, has_features,
                  out_itemsize, budget):
    """Largest (tm, tk) divisors of n whose double-buffered footprint fits budget."""
    tm_cands = [t for t in (512, 256, 128, 64, 32, 16, 8) if t <= n and n % t == 0] or [n]
    tk_cands = [t for t in (512, 256, 128) if t <= n and n % t == 0] or [n]

    def footprint(tm, tk):
        est = 2 * num_rel * tm * tk * 2                   # A tiles (double-buffered bf16)
        est += 2 * num_groups * f_in_p * f_out_p * 2      # resident W stack (2x to be safe)
        est += 2 * tm * f_out_p * out_itemsize            # output block
        if has_features:
            est += 2 * tk * f_in_p * 2                    # X chunk
            est += num_groups * tm * f_in_p * 4           # ax f32 accumulator scratch
        else:
            est += tm * f_out_p * 4                       # out f32 accumulator scratch
        return est

    tm, tk = tm_cands[-1], tk_cands[-1]
    done = False
    for tm_c in tm_cands:
        for tk_c in tk_cands:
            if footprint(tm_c, tk_c) <= budget:
                tm, tk, done = tm_c, tk_c, True
                break
        if done:
            break
    # Megacore (v7x): make sure the "parallel" row axis has >= 2 iterations.
    while n // tm < 2 and tm % 16 == 0:
        tm //= 2
    return tm, tk, footprint(tm, tk)


def _combine_tile(w_rel_ref, a_ref, g, num_rel, use_combine):
    """Ab_tile[g] = sum_r w_rel[r, g] * A[r]_tile  (f32 VPU combine, one cast to bf16)."""
    if not use_combine:
        return a_ref[g]                        # per-relation weights: identity combine
    acc = w_rel_ref[0, g] * a_ref[0].astype(jnp.float32)
    for r in range(1, num_rel):
        acc = acc + w_rel_ref[r, g] * a_ref[r].astype(jnp.float32)
    return acc.astype(jnp.bfloat16)


def _rgcn_featureless_kernel(w_rel_ref, a_ref, w_ref, o_ref, acc_ref, *,
                             num_rel, num_groups, use_combine, apply_relu, tk, num_k):
    # out_tile = sum_g Ab[g]_tile @ W[g]
    if num_k == 1:
        acc = jnp.zeros(o_ref.shape, jnp.float32)
        for g in range(num_groups):
            ab = _combine_tile(w_rel_ref, a_ref, g, num_rel, use_combine)
            acc = acc + jnp.dot(ab, w_ref[g], preferred_element_type=jnp.float32)
        if apply_relu:
            acc = jnp.maximum(acc, 0.0)
        o_ref[...] = acc.astype(o_ref.dtype)
        return

    # K-tiled path (large N / v7x): accumulate over column chunks in f32 scratch.
    k = pl.program_id(1)

    @pl.when(k == 0)
    def _():
        acc_ref[...] = jnp.zeros_like(acc_ref)

    start = pl.multiple_of(k * tk, 128)
    for g in range(num_groups):
        ab = _combine_tile(w_rel_ref, a_ref, g, num_rel, use_combine)
        w_chunk = w_ref[g, pl.ds(start, tk), :]
        acc_ref[...] += jnp.dot(ab, w_chunk, preferred_element_type=jnp.float32)

    @pl.when(k == num_k - 1)
    def _():
        res = acc_ref[...]
        if apply_relu:
            res = jnp.maximum(res, 0.0)
        o_ref[...] = res.astype(o_ref.dtype)


def _rgcn_feature_kernel(w_rel_ref, a_ref, x_ref, w_ref, o_ref, ax_ref, *,
                         num_rel, num_groups, use_combine, apply_relu, num_k):
    # out_tile = sum_g (Ab[g]_tile @ X) @ W[g]
    if num_k == 1:
        x = x_ref[...]
        acc = jnp.zeros(o_ref.shape, jnp.float32)
        for g in range(num_groups):
            ab = _combine_tile(w_rel_ref, a_ref, g, num_rel, use_combine)
            # MXU accumulates in f32 internally; emitting bf16 avoids a VPU cast
            # and halves the intermediate writeback.
            ax = jnp.dot(ab, x, preferred_element_type=jnp.bfloat16)
            acc = acc + jnp.dot(ax, w_ref[g], preferred_element_type=jnp.float32)
        if apply_relu:
            acc = jnp.maximum(acc, 0.0)
        o_ref[...] = acc.astype(o_ref.dtype)
        return

    # K-tiled path: accumulate Ab@X over column chunks (f32 scratch), apply the
    # small W matmul only once at the last chunk.
    k = pl.program_id(1)

    @pl.when(k == 0)
    def _():
        ax_ref[...] = jnp.zeros_like(ax_ref)

    x = x_ref[...]
    for g in range(num_groups):
        ab = _combine_tile(w_rel_ref, a_ref, g, num_rel, use_combine)
        ax_ref[g] += jnp.dot(ab, x, preferred_element_type=jnp.float32)

    @pl.when(k == num_k - 1)
    def _():
        acc = jnp.zeros(o_ref.shape, jnp.float32)
        for g in range(num_groups):
            acc = acc + jnp.dot(ax_ref[g].astype(jnp.bfloat16), w_ref[g],
                                preferred_element_type=jnp.float32)
        if apply_relu:
            acc = jnp.maximum(acc, 0.0)
        o_ref[...] = acc.astype(o_ref.dtype)


def rgcn_layer_pallas(A, w_rel, W, X=None, *, apply_relu, out_dtype, use_combine):
    """One R-GCN layer.

    A     : (R, N, N)             bf16 relation adjacencies (read once from HBM).
    w_rel : (R, G)                f32 basis-combination coefficients (SMEM).
    W     : (G, f_in_p, f_out_p)  bf16 lane-padded weights (VMEM resident).
    X     : (N, f_in_p)           bf16 activations, or None (featureless layer).
    Returns (N, f_out_p) in out_dtype (bf16 hidden / f32 final), ReLU fused.
    """
    num_rel, n, _ = (int(s) for s in A.shape)
    num_groups, f_in_p, f_out_p = (int(s) for s in W.shape)
    has_features = X is not None
    out_itemsize = jnp.dtype(out_dtype).itemsize

    budget = _vmem_budget_bytes()
    tm, tk, est = _choose_tiles(n, num_rel, num_groups, f_in_p, f_out_p,
                                has_features, out_itemsize, budget)
    num_k = n // tk
    grid = (n // tm, num_k)

    in_specs = [
        pl.BlockSpec(memory_space=pltpu.MemorySpace.SMEM),              # w_rel
        pl.BlockSpec((num_rel, tm, tk), lambda i, k: (0, i, k)),        # A tiles
    ]
    args = [w_rel, A]
    if has_features:
        in_specs.append(pl.BlockSpec((tk, f_in_p), lambda i, k: (k, 0)))  # X chunk
        args.append(X)
    in_specs.append(pl.BlockSpec((num_groups, f_in_p, f_out_p),
                                 lambda i, k: (0, 0, 0)))               # resident W
    args.append(W)

    if has_features:
        kernel = functools.partial(
            _rgcn_feature_kernel, num_rel=num_rel, num_groups=num_groups,
            use_combine=use_combine, apply_relu=apply_relu, num_k=num_k)
        scratch = [pltpu.VMEM((num_groups, tm, f_in_p), jnp.float32)]
        flops = 2 * num_groups * (n * n * f_in_p + n * f_in_p * f_out_p)
    else:
        kernel = functools.partial(
            _rgcn_featureless_kernel, num_rel=num_rel, num_groups=num_groups,
            use_combine=use_combine, apply_relu=apply_relu, tk=tk, num_k=num_k)
        scratch = [pltpu.VMEM((tm, f_out_p), jnp.float32)]
        flops = 2 * num_groups * n * n * f_out_p
    if use_combine:
        flops += 2 * num_rel * num_groups * n * n

    bytes_accessed = (num_rel * n * n * 2
                      + num_groups * f_in_p * f_out_p * 2
                      + n * f_out_p * out_itemsize)
    if has_features:
        bytes_accessed += (n // tm) * n * f_in_p * 2

    vmem_limit = int(min(budget, max(2 * est, 32 << 20)))

    return pl.pallas_call(
        kernel,
        out_shape=jax.ShapeDtypeStruct((n, f_out_p), out_dtype),
        grid_spec=pltpu.PrefetchScalarGridSpec(
            num_scalar_prefetch=0,
            grid=grid,
            in_specs=in_specs,
            out_specs=pl.BlockSpec((tm, f_out_p), lambda i, k: (i, 0)),
            scratch_shapes=scratch,
        ),
        compiler_params=pltpu.CompilerParams(
            dimension_semantics=("parallel", "arbitrary"),
            vmem_limit_bytes=vmem_limit,
        ),
        cost_estimate=pl.CostEstimate(flops=flops, transcendentals=0,
                                      bytes_accessed=bytes_accessed),
    )(*args)


def _xavier_uniform(key, shape, fan_in, fan_out):
    bound = (6.0 / (fan_in + fan_out)) ** 0.5
    return jax.random.uniform(key, shape, jnp.float32, -bound, bound)


class RelationalGraphConvModelPallas:
    """Mirrors RelationalGraphConvModel(input_size, hidden, out, num_bases, num_rel,
    num_layer, dropout, featureless=True, bias=False)."""

    def __init__(self, input_size, hidden_size, output_size, num_bases, num_rel,
                 num_layer, dropout, key):
        self.num_layer = num_layer
        self.num_rel = num_rel
        self.num_bases = num_bases
        self.dropout = dropout
        self.output_size = output_size
        self.params = []
        for i in range(num_layer):
            if i == 0:
                f_in, f_out = input_size, hidden_size
            elif i == num_layer - 1:
                f_in, f_out = hidden_size, output_size
            else:
                f_in, f_out = hidden_size, hidden_size
            key, k1, k2 = jax.random.split(key, 3)
            if num_bases > 0:
                w_bases = _xavier_uniform(k1, (num_bases, f_in, f_out), f_in, f_out)
                w_rel = _xavier_uniform(k2, (num_rel, num_bases), num_rel, num_bases)
                self.params.append(("bases", w_bases, w_rel, f_in, f_out))
            else:
                w = _xavier_uniform(k1, (num_rel, f_in, f_out), f_in, f_out)
                self.params.append(("full", w, None, f_in, f_out))

    def __call__(self, A, X=None):
        # NOTE: for demo-scale graphs a fully-fused single pallas_call (all layers)
        # would also remove inter-layer HBM round trips; kept per-layer for clarity.
        A_bf16 = A.astype(jnp.bfloat16)          # binary adjacencies: exact in bf16
        x = None
        if X is not None:
            f_in0 = self.params[0][3]
            f_in0_p = _round_up(f_in0, 128)
            x = jnp.pad(X, ((0, 0), (0, f_in0_p - X.shape[1]))).astype(jnp.bfloat16)
        for i in range(self.num_layer):
            kind, w_main, w_rel, f_in, f_out = self.params[i]
            f_in_p = f_in if (i == 0 and x is None) else _round_up(f_in, 128)
            f_out_p = _round_up(f_out, 128)
            Wg = jnp.pad(w_main, ((0, 0), (0, f_in_p - f_in), (0, f_out_p - f_out)))
            Wg = Wg.astype(jnp.bfloat16)
            if kind == "bases":
                wr, use_combine = w_rel, True
            else:
                wr, use_combine = jnp.eye(self.num_rel, dtype=jnp.float32), False
            last = (i == self.num_layer - 1)
            x = rgcn_layer_pallas(
                A_bf16, wr, Wg, X=x,
                apply_relu=not last,
                out_dtype=jnp.float32 if last else jnp.bfloat16,
                use_combine=use_combine)
            # TODO(synk): F.dropout not applied (inference / eval-mode identity semantics).
        return x[:, : self.output_size].astype(jnp.float32)

    def reference(self, A, X=None):
        """Plain-JAX f32 reference for correctness checking."""
        x = X
        for i in range(self.num_layer):
            kind, w_main, w_rel, _, _ = self.params[i]
            W = jnp.einsum("rb,bio->rio", w_rel, w_main) if kind == "bases" else w_main
            if x is None:
                out = jnp.einsum("rnm,rmo->no", A, W)
            else:
                out = jnp.einsum("rnm,mf,rfo->no", A, x, W)
            if i != self.num_layer - 1:
                out = jnp.maximum(out, 0.0)
            x = out
        return x


if __name__ == "__main__":
    key = jax.random.PRNGKey(0)
    k_a, k_model = jax.random.split(key)

    # Small, TPU-friendly shapes implied by the forward pass.
    num_nodes = 64          # N (featureless => input_size == N)
    num_rel = 4             # R relations
    num_bases = 2           # B bases (< R: basis trick halves matmul passes)
    hidden_size = 32
    output_size = 16
    num_layer = 3

    # Dense relation adjacency stack (R, N, N), sparse-ish but kept dense.
    A = (jax.random.uniform(k_a, (num_rel, num_nodes, num_nodes)) > 0.8).astype(jnp.float32)

    model = RelationalGraphConvModelPallas(
        input_size=num_nodes,
        hidden_size=hidden_size,
        output_size=output_size,
        num_bases=num_bases,
        num_rel=num_rel,
        num_layer=num_layer,
        dropout=0.0,
        key=k_model,
    )

    out = jax.block_until_ready(model(A))
    ref = jax.block_until_ready(model.reference(A))

    assert out.shape == (num_nodes, output_size)
    # bf16 A/X/W vs f32 reference -> compare with a relative max-error.
    rel_err = jnp.max(jnp.abs(out - ref)) / (jnp.max(jnp.abs(ref)) + 1e-6)
    assert rel_err < 5e-2, f"mismatch vs reference: rel max err {rel_err}"

    print("KERNEL_OK")
</pallas_src>

<mosaic_0001>
module attributes {stable_mosaic.version = 11 : i64} {
  func.func @_rgcn_featureless_kernel(%arg0: i32, %arg1: i32, %arg2: memref<4x2xf32, #tpu.memory_space<smem>>, %arg3: memref<4x32x64xbf16, #tpu.memory_space<vmem>>, %arg4: memref<2x64x128xbf16, #tpu.memory_space<vmem>>, %arg5: memref<32x128xbf16, #tpu.memory_space<vmem>>, %arg6: memref<32x128xf32, #tpu.memory_space<vmem>>) attributes {dimension_semantics = [#tpu.dimension_semantics<parallel>, #tpu.dimension_semantics<arbitrary>], iteration_bounds = array<i64: 2, 1>, scalar_prefetch = 0 : i64, scratch_operands = 1 : i64, tpu.core_type = #tpu.core_type<tc>, window_params = [{transform_indices = @transform_0, window_bounds = array<i64: 4, 2>}, {transform_indices = @transform_1, window_bounds = array<i64: 4, 32, 64>}, {pipeline_mode = #tpu.pipeline_mode<synchronous>, transform_indices = @transform_2, window_bounds = array<i64: 2, 64, 128>}, {transform_indices = @transform_3, window_bounds = array<i64: 32, 128>}]} {
    %cst = arith.constant 0.000000e+00 : f32
    %0 = vector.broadcast %cst : f32 to vector<32x128xf32>
    %c0 = arith.constant 0 : index
    %c0_0 = arith.constant 0 : index
    %1 = memref.load %arg2[%c0, %c0_0] : memref<4x2xf32, #tpu.memory_space<smem>>
    %c0_1 = arith.constant 0 : index
    %c0_2 = arith.constant 0 : index
    %c0_3 = arith.constant 0 : index
    %2 = vector.load %arg3[%c0_1, %c0_2, %c0_3] : memref<4x32x64xbf16, #tpu.memory_space<vmem>>, vector<1x32x64xbf16>
    %3 = vector.shape_cast %2 : vector<1x32x64xbf16> to vector<32x64xbf16>
    %4 = arith.extf %3 : vector<32x64xbf16> to vector<32x64xf32>
    %5 = vector.broadcast %1 : f32 to vector<32x64xf32>
    %6 = arith.mulf %5, %4 : vector<32x64xf32>
    %c1 = arith.constant 1 : index
    %c0_4 = arith.constant 0 : index
    %7 = memref.load %arg2[%c1, %c0_4] : memref<4x2xf32, #tpu.memory_space<smem>>
    %c1_5 = arith.constant 1 : index
    %c0_6 = arith.constant 0 : index
    %c0_7 = arith.constant 0 : index
    %8 = vector.load %arg3[%c1_5, %c0_6, %c0_7] : memref<4x32x64xbf16, #tpu.memory_space<vmem>>, vector<1x32x64xbf16>
    %9 = vector.shape_cast %8 : vector<1x32x64xbf16> to vector<32x64xbf16>
    %10 = arith.extf %9 : vector<32x64xbf16> to vector<32x64xf32>
    %11 = vector.broadcast %7 : f32 to vector<32x64xf32>
    %12 = arith.mulf %11, %10 : vector<32x64xf32>
    %13 = arith.addf %6, %12 : vector<32x64xf32>
    %c2 = arith.constant 2 : index
    %c0_8 = arith.constant 0 : index
    %14 = memref.load %arg2[%c2, %c0_8] : memref<4x2xf32, #tpu.memory_space<smem>>
    %c2_9 = arith.constant 2 : index
    %c0_10 = arith.constant 0 : index
    %c0_11 = arith.constant 0 : index
    %15 = vector.load %arg3[%c2_9, %c0_10, %c0_11] : memref<4x32x64xbf16, #tpu.memory_space<vmem>>, vector<1x32x64xbf16>
    %16 = vector.shape_cast %15 : vector<1x32x64xbf16> to vector<32x64xbf16>
    %17 = arith.extf %16 : vector<32x64xbf16> to vector<32x64xf32>
    %18 = vector.broadcast %14 : f32 to vector<32x64xf32>
    %19 = arith.mulf %18, %17 : vector<32x64xf32>
    %20 = arith.addf %13, %19 : vector<32x64xf32>
    %c3 = arith.constant 3 : index
    %c0_12 = arith.constant 0 : index
    %21 = memref.load %arg2[%c3, %c0_12] : memref<4x2xf32, #tpu.memory_space<smem>>
    %c3_13 = arith.constant 3 : index
    %c0_14 = arith.constant 0 : index
    %c0_15 = arith.constant 0 : index
    %22 = vector.load %arg3[%c3_13, %c0_14, %c0_15] : memref<4x32x64xbf16, #tpu.memory_space<vmem>>, vector<1x32x64xbf16>
    %23 = vector.shape_cast %22 : vector<1x32x64xbf16> to vector<32x64xbf16>
    %24 = arith.extf %23 : vector<32x64xbf16> to vector<32x64xf32>
    %25 = vector.broadcast %21 : f32 to vector<32x64xf32>
    %26 = arith.mulf %25, %24 : vector<32x64xf32>
    %27 = arith.addf %20, %26 : vector<32x64xf32>
    %28 = arith.truncf %27 : vector<32x64xf32> to vector<32x64xbf16>
    %c0_16 = arith.constant 0 : index
    %c0_17 = arith.constant 0 : index
    %c0_18 = arith.constant 0 : index
    %29 = vector.load %arg4[%c0_16, %c0_17, %c0_18] : memref<2x64x128xbf16, #tpu.memory_space<vmem>>, vector<1x64x128xbf16>
    %30 = vector.shape_cast %29 : vector<1x64x128xbf16> to vector<64x128xbf16>
    %cst_19 = arith.constant dense<0.000000e+00> : vector<32x128xf32>
    %31 = tpu.matmul %28, %30, %cst_19 {dimension_numbers = #tpu.dot_dimension_numbers<[1], [0], [0], [1], [0, 0, 1, 1], [], []>} : vector<32x64xbf16>, vector<64x128xbf16>, vector<32x128xf32> -> vector<32x128xf32>
    %32 = arith.addf %0, %31 : vector<32x128xf32>
    %c0_20 = arith.constant 0 : index
    %c1_21 = arith.constant 1 : index
    %33 = memref.load %arg2[%c0_20, %c1_21] : memref<4x2xf32, #tpu.memory_space<smem>>
    %c0_22 = arith.constant 0 : index
    %c0_23 = arith.constant 0 : index
    %c0_24 = arith.constant 0 : index
    %34 = vector.load %arg3[%c0_22, %c0_23, %c0_24] : memref<4x32x64xbf16, #tpu.memory_space<vmem>>, vector<1x32x64xbf16>
    %35 = vector.shape_cast %34 : vector<1x32x64xbf16> to vector<32x64xbf16>
    %36 = arith.extf %35 : vector<32x64xbf16> to vector<32x64xf32>
    %37 = vector.broadcast %33 : f32 to vector<32x64xf32>
    %38 = arith.mulf %37, %36 : vector<32x64xf32>
    %c1_25 = arith.constant 1 : index
    %c1_26 = arith.constant 1 : index
    %39 = memref.load %arg2[%c1_25, %c1_26] : memref<4x2xf32, #tpu.memory_space<smem>>
    %c1_27 = arith.constant 1 : index
    %c0_28 = arith.constant 0 : index
    %c0_29 = arith.constant 0 : index
    %40 = vector.load %arg3[%c1_27, %c0_28, %c0_29] : memref<4x32x64xbf16, #tpu.memory_space<vmem>>, vector<1x32x64xbf16>
    %41 = vector.shape_cast %40 : vector<1x32x64xbf16> to vector<32x64xbf16>
    %42 = arith.extf %41 : vector<32x64xbf16> to vector<32x64xf32>
    %43 = vector.broadcast %39 : f32 to vector<32x64xf32>
    %44 = arith.mulf %43, %42 : vector<32x64xf32>
    %45 = arith.addf %38, %44 : vector<32x64xf32>
    %c2_30 = arith.constant 2 : index
    %c1_31 = arith.constant 1 : index
    %46 = memref.load %arg2[%c2_30, %c1_31] : memref<4x2xf32, #tpu.memory_space<smem>>
    %c2_32 = arith.constant 2 : index
    %c0_33 = arith.constant 0 : index
    %c0_34 = arith.constant 0 : index
    %47 = vector.load %arg3[%c2_32, %c0_33, %c0_34] : memref<4x32x64xbf16, #tpu.memory_space<vmem>>, vector<1x32x64xbf16>
    %48 = vector.shape_cast %47 : vector<1x32x64xbf16> to vector<32x64xbf16>
    %49 = arith.extf %48 : vector<32x64xbf16> to vector<32x64xf32>
    %50 = vector.broadcast %46 : f32 to vector<32x64xf32>
    %51 = arith.mulf %50, %49 : vector<32x64xf32>
    %52 = arith.addf %45, %51 : vector<32x64xf32>
    %c3_35 = arith.constant 3 : index
    %c1_36 = arith.constant 1 : index
    %53 = memref.load %arg2[%c3_35, %c1_36] : memref<4x2xf32, #tpu.memory_space<smem>>
    %c3_37 = arith.constant 3 : index
    %c0_38 = arith.constant 0 : index
    %c0_39 = arith.constant 0 : index
    %54 = vector.load %arg3[%c3_37, %c0_38, %c0_39] : memref<4x32x64xbf16, #tpu.memory_space<vmem>>, vector<1x32x64xbf16>
    %55 = vector.shape_cast %54 : vector<1x32x64xbf16> to vector<32x64xbf16>
    %56 = arith.extf %55 : vector<32x64xbf16> to vector<32x64xf32>
    %57 = vector.broadcast %53 : f32 to vector<32x64xf32>
    %58 = arith.mulf %57, %56 : vector<32x64xf32>
    %59 = arith.addf %52, %58 : vector<32x64xf32>
    %60 = arith.truncf %59 : vector<32x64xf32> to vector<32x64xbf16>
    %c1_40 = arith.constant 1 : index
    %c0_41 = arith.constant 0 : index
    %c0_42 = arith.constant 0 : index
    %61 = vector.load %arg4[%c1_40, %c0_41, %c0_42] : memref<2x64x128xbf16, #tpu.memory_space<vmem>>, vector<1x64x128xbf16>
    %62 = vector.shape_cast %61 : vector<1x64x128xbf16> to vector<64x128xbf16>
    %cst_43 = arith.constant dense<0.000000e+00> : vector<32x128xf32>
    %63 = tpu.matmul %60, %62, %cst_43 {dimension_numbers = #tpu.dot_dimension_numbers<[1], [0], [0], [1], [0, 0, 1, 1], [], []>} : vector<32x64xbf16>, vector<64x128xbf16>, vector<32x128xf32> -> vector<32x128xf32>
    %64 = arith.addf %32, %63 : vector<32x128xf32>
    %cst_44 = arith.constant 0.000000e+00 : f32
    %65 = vector.broadcast %cst_44 : f32 to vector<32x128xf32>
    %66 = arith.maximumf %64, %65 : vector<32x128xf32>
    %67 = arith.truncf %66 : vector<32x128xf32> to vector<32x128xbf16>
    %c0_45 = arith.constant 0 : index
    %c0_46 = arith.constant 0 : index
    %68 = vector.load %arg5[%c0_45, %c0_46] : memref<32x128xbf16, #tpu.memory_space<vmem>>, vector<32x128xbf16>
    tpu.vector_store %arg5[%c0_45, %c0_46], %67 {strides = array<i32>} : memref<32x128xbf16, #tpu.memory_space<vmem>>, vector<32x128xbf16>,
    return
  }
  func.func @transform_0(%arg0: i32, %arg1: i32) -> (i32, i32) {
    %c0_i32 = arith.constant 0 : i32
    %c0_i32_0 = arith.constant 0 : i32
    %c0_i32_1 = arith.constant 0 : i32
    return %c0_i32, %c0_i32_0 : i32, i32
  }
  func.func @transform_1(%arg0: i32, %arg1: i32) -> (i32, i32, i32) {
    %c0_i32 = arith.constant 0 : i32
    %c0_i32_0 = arith.constant 0 : i32
    return %c0_i32, %arg0, %arg1 : i32, i32, i32
  }
  func.func @transform_2(%arg0: i32, %arg1: i32) -> (i32, i32, i32) {
    %c0_i32 = arith.constant 0 : i32
    %c0_i32_0 = arith.constant 0 : i32
    %c0_i32_1 = arith.constant 0 : i32
    %c0_i32_2 = arith.constant 0 : i32
    return %c0_i32, %c0_i32_0, %c0_i32_1 : i32, i32, i32
  }
  func.func @transform_3(%arg0: i32, %arg1: i32) -> (i32, i32) {
    %c0_i32 = arith.constant 0 : i32
    %c0_i32_0 = arith.constant 0 : i32
    return %arg0, %c0_i32 : i32, i32
  }
}

</mosaic_0001>

<bundles_post_ra>
// kernel: tpu_custom_call.1
= control target key start
LH: loop header
LB: loop body
LE: loop exit
PB: predicated region body
PF: predicated region fallthrough
CT: control target
= control target key end

     0   :  { %8 = vsyncpa [#allocation6], 0  ;;  %s1328_s0 = inlined_call_operand.vmem [shape: f32[4,2], index: 0, kind: input, shape index: {}]   ;;  %s1329_s1 = inlined_call_operand.hbm [shape: bf16[4,64,64], index: 1, kind: input, shape index: {}]   ;;  %s1330_s2 = inlined_call_operand.hbm [shape: bf16[2,64,128], index: 2, kind: input, shape index: {}]   ;;  %s1331_s3 = inlined_call_operand.hbm [shape: bf16[64,128], index: 3, kind: output, shape index: {}]  }
   0x1   :  { %9 = vsyncpa [#allocation4], 0 }
   0x2   :  { %11 = vsyncpa [#allocation4 + $0x1], 0 }
   0x3   :  { %12 = vsyncpa [#allocation9], 0 }
   0x4   :  { %13 = vsyncpa [#allocation5], 0 }
   0x5   :  { %15 = vsyncpa [#allocation5 + $0x1], 0  ;;  %s1028_s12 = smov 0   ;;  %s1030_s13 = smov 0  }
   0x6   :  { %s1032_s14 = smov 0   ;;  %s1034_s15 = smov 0  }
   0x7   :  { %s1036_s16 = smov 0   ;;  %s1038_s17 = smov 0  }
   0x8 LB: > { %s622_s18 = sadd.s32 4294967295, %s995_s17   ;;  %s623_s19 = sadd.s32 4294967294, %s995_s17   ;;  %s995_s17 = sphi %s1038_s17, %s21_s17   ;;  %s991_s16 = sphi %s1036_s16, %s1342_s16   ;;  %s987_s15 = sphi %s1034_s15, %s1341_s15   ;;  %s983_s14 = sphi %s1032_s14, %s1340_s14   ;;  %s979_s13 = sphi %s1030_s13, %s1339_s13   ;;  %s975_s12 = sphi %s1028_s12, %s1338_s12  }
   0x9   : > { %s33_s20 = sadd.s32 1, %s991_s16  ;;  %s63_s21 = sadd.s32 1, %s983_s14 }
   0xa   : > { %p35_p0 = scmp.ge.s32.totalorder %s33_s20, 2  ;;  %p70_p1 = scmp.ne.s32.totalorder %s983_s14, %s979_s13 }
   0xb   : > { %p71_p2 = scmp.eq.s32.totalorder %s995_s17, 0  ;;  %p76_p3 = scmp.ne.s32.totalorder %s979_s13, %s975_s12 }
   0xc   : > { %s1344_s20 = smov (%p35_p0, %s33_s20), 0  ;;  %p1073_p5 = scmp.eq.s32.totalorder %s622_s18, 0 }
   0xd   : > { %p1069_p4 = por %p71_p2, %p70_p1  ;;  %s58_s24 = ssub.s32 %s991_s16, %s1344_s20 }
   0xe   : > { %p121_p6 = scmp.eq.s32.totalorder %s622_s18, 1  ;;  %p61_p7 = scmp.eq.s32.totalorder %s58_s24, 0 }
   0xf   : > { %p1081_p8 = por %p1073_p5, %p76_p3  ;;  %p127_p10 = scmp.eq.s32.totalorder %s623_s19, 1 }
  0x10   : > { %p1085_p9 = por %p121_p6, %p70_p1  ;;  %p624_p12 = scmp.ge.s32.totalorder %s995_s17, 1 }
  0x11   : > { %s1090_s27 = scalar_select %p61_p7, %s983_s14, %s63_s21  }
  0x12   : > { %p1092_p11 = por %p127_p10, %p76_p3  ;;  %p134_p13 = scmp.lt.s32.totalorder %s995_s17, 3 }
  0x13   : > { %s146_s4 = sshll.u32 %s1328_s0, 4  ;;  %s155_s8 = sshll.u32 %s1330_s2, 4  ;;  %s147_s4 = int_to_ptr.vmem [resolvable:$true] %s146_s4  ;;  %s156_s8 = int_to_ptr.hbm [resolvable:$true] %s155_s8 }
  0x14   : > { %p1101_p0 = pnand %p624_p12, %p134_p13  ;;  %s997_s9 = smov [#allocation8]  }
  0x15   : > { %s157_s10 = sshll.u32 %s997_s9, 4  ;;  %s998_s11 = smov [#allocation3]   ;;  %s158_s10 = int_to_ptr.vmem [resolvable:$true] %s157_s10 }
  0x16   : > { %p785_p1 = pneg %p1101_p0  ;;  %s999_s18 = smov 64  }
  0x17   : > { %s1000_s19 = smov 4   ;;  %p627_p3 = scmp.ge.s32.totalorder %s995_s17, 2 }
  0x18   : > { %p786_p2 = pnand %p785_p1, %p1073_p5 }
  0x19   : > { %167 = sbr.rel (%p627_p3) target bundleno = 43 (0x2b), region = 24 }
  0x1a   : > { %788 = dma.vmem_to_smem (!%p786_p2), %s147_s4, 64, %s998_s11, [#allocation6]  }
  0x1b   : > { %791 = dma.hbm_to_vmem [thread:$0]  (!%p786_p2), %s156_s8, 1024, %s158_s10, [#allocation9], %s999_s18, %s999_s18, %s1000_s19  }
  0x1e   : > { %s171_s21 = sand.u32 1, %s983_s14   ;;  %s698_s24 = sshll.u32 %s991_s16, 4 }
  0x1f   : > { %s628_s29 = sshll.u32 %s171_s21, 6  ;;  %s181_s4 = scalar_lea.hbm %s1329_s1, %s698_s24 }
  0x20   : > { %s770_s7 = scalar_select %p1069_p4, [#allocation0], [#allocation13] }
  0x21   : > { %s194_s8 = sshll.u32 %s181_s4, 4  ;;  %s175_s9 = scalar_lea.vmem [#allocation7], %s628_s29  ;;  %s195_s8 = int_to_ptr.hbm [resolvable:$true] %s194_s8 }
  0x22   : > { %s196_s10 = sshll.u32 %s175_s9, 4  ;;  %s186_s11 = sld [smem:[%s770_s7]]   ;;  %s197_s10 = int_to_ptr.vmem [resolvable:$true] %s196_s10 }
  0x23   : > { %s1001_s18 = smov 512   ;;  %s1002_s19 = smov 256  }
  0x24   : > { %771 = sst [smem:[#allocation12]] (%p1069_p4), %s1001_s18  ;;  %s1003_s30 = smov 4  }
  0x25   : > { %772 = sst [smem:[#allocation12 + $0x1]] (%p1069_p4), %s1002_s19  ;;  %s1004_s24 = smov 64  }
  0x26   : > { %773 = sst [smem:[#allocation12 + $0x2]] (%p1069_p4), %s1003_s30  ;;  %s172_s4 = scalar_lea.sflag [#allocation4], %s171_s21 }
  0x27   : > { %774 = sst [smem:[#allocation12 + $0x3]] (%p1069_p4), %s1004_s24  ;;  %s1005_s7 = smov [#allocation11]  }
  0x28   : > { %s631_s6 = sshll.u32 %s186_s11, 26  ;;  %775 = sst [smem:[#allocation12 + $0x4]] (%p1069_p4), %s1004_s24 }
  0x29   : > { %s632_s29 = sadd.s32 134217728, %s631_s6  ;;  %776 = sst [smem:[#allocation12 + $0x5]] (%p1069_p4), %s1003_s30 }
  0x2a   : > { %777 = dma.general (%p1069_p4), %s195_s8, 1024, %s197_s10, %s172_s4, %s1005_s7, [#allocation12], %s632_s29, 0  }
  0x2b PF: > { %221 = sbr.rel (%p1101_p0) target bundleno = 236 (0xec), region = 32 }
  0x30   : > { %958 = dma.done.wait (%p1073_p5), [#allocation6], 64  }
  0x31   : > { %960 = vsyncadd (%p1073_p5), [#allocation6], 4294967232  ;;  %s1143_s9 = sand.u32 1, %s979_s13  }
  0x32   : > { %s635_s21 = sshll.u32 %s1143_s9, 6  ;;  %s229_s11 = scalar_lea.sflag [#allocation4], %s1143_s9 }
  0x33   : > { %s1147_s22 = scalar_lea.vmem [#allocation7], %s635_s21 }
  0x34   : > { %962 = dma.done.wait (%p1081_p8), %s229_s11, 1024  }
  0x35   : > { %964 = vsyncadd (%p1081_p8), %s229_s11, 4294966272 }
  0x36   : > { %966 = dma.done.wait (%p1073_p5), [#allocation9], 1024  }
  0x37   : > { %968 = vsyncadd (%p1073_p5), [#allocation9], 4294966272 }
  0x38   : > { %243 = sfence }
  0x39   : > { %v706_v0 = vld [vmem:[#allocation8 + $0x38] sm:$0xff]  ;;  %s1157_s5 = sld [smem:[#allocation3 + $0x1]]  ;;  %v705_v2 = vld [vmem:[#allocation8 + $0x30] sm:$0xff]  ;;  %v1162_v4 = vld [vmem:[%s1147_s22] sm:$0xff]   ;;  %vm417_vm0 = vcmask 523264   ;;  %s637_s24 = sshll.u32 %s1143_s9, 4 }
  0x3a   : > { %v702_v1 = vld [vmem:[#allocation8 + $0x18] sm:$0xff]  ;;  %s1159_s8 = sld [smem:[#allocation3 + $0x81]]  ;;  %428 = vmatpush.bf16.msra.mxu0 %v706_v0  ;;  %758 = vmatpush.bf16.msra.mxu2 %v706_v0  ;;  %v701_v3 = vld [vmem:[#allocation8 + $0x10] sm:$0xff]  ;;  %v710_v5 = vunpack.c.l.bf16 %v1162_v4  ;;  %v711_v6 = vunpack.c.h.bf16 %v1162_v4  ;;  %v1172_v8 = vld [vmem:[%s1147_s22 + $0x20] sm:$0xff]   ;;  %s707_s6 = sshll.u32 %s987_s15, 4 }
  0x3b   : > { %s1164_s23 = sld [smem:[#allocation3 + $0x101]]  ;;  %477 = vmatpush.bf16.msra.mxu1 %v702_v1  ;;  %762 = vmatpush.bf16.msra.mxu3 %v702_v1  ;;  %v1169_v7 = vld [vmem:[%s1147_s22 + $0x10] sm:$0xff]   ;;  %v726_v12 = vunpack.c.l.bf16 %v1172_v8  ;;  %v727_v13 = vunpack.c.h.bf16 %v1172_v8  ;;  %v1184_v14 = vld [vmem:[%s1147_s22 + $0x8] sm:$0xff]   ;;  %v1187_v15 = vld [vmem:[%s1147_s22 + $0x18] sm:$0xff]   ;;  %s261_s29 = scalar_lea.vmem [#allocation10], %s637_s24 }
  0x3c   : > { %v1175_v9 = vld [vmem:[%s1147_s22 + $0x30] sm:$0xff]   ;;  %s1177_s25 = sld [smem:[#allocation3 + $0x181]]  ;;  %v718_v10 = vunpack.c.l.bf16 %v1169_v7  ;;  %v719_v11 = vunpack.c.h.bf16 %v1169_v7  ;;  %v1190_v16 = vld [vmem:[%s1147_s22 + $0x28] sm:$0xff]   ;;  %v714_v19 = vunpack.c.l.bf16 %v1184_v14  ;;  %v715_v20 = vunpack.c.h.bf16 %v1184_v14  ;;  %v1199_v21 = vld [vmem:[%s1147_s22 + $0x38] sm:$0xff]   ;;  %s516_s21 = scalar_lea.hbm %s1331_s3, %s707_s6 }
  0x3d   : > { %s1192_s10 = sld [smem:[#allocation3]]  ;;  %v734_v17 = vunpack.c.l.bf16 %v1175_v9  ;;  %v735_v18 = vunpack.c.h.bf16 %v1175_v9  ;;  %v704_v22 = vld [vmem:[#allocation8 + $0x28] sm:$0xff]  ;;  %v722_v24 = vunpack.c.l.bf16 %v1187_v15  ;;  %v723_v25 = vunpack.c.h.bf16 %v1187_v15  ;;  %v703_v40 = vld [vmem:[#allocation8 + $0x20] sm:$0xff]  ;;  %s517_s11 = sshll.u32 %s261_s29, 4  ;;  %s518_s11 = int_to_ptr.vmem [resolvable:$true] %s517_s11 }
  0x3e   : > { %s1201_s18 = sld [smem:[#allocation3 + $0x80]]  ;;  %429 = vmatpush.bf16.msra.mxu0 %v705_v2  ;;  %759 = vmatpush.bf16.msra.mxu2 %v705_v2  ;;  %v730_v26 = vunpack.c.l.bf16 %v1190_v16  ;;  %v700_v27 = vld [vmem:[#allocation8 + $0x8] sm:$0xff]  ;;  %v731_v31 = vunpack.c.h.bf16 %v1190_v16  ;;  %v738_v35 = vunpack.c.l.bf16 %v1199_v21  ;;  %v739_v39 = vunpack.c.h.bf16 %v1199_v21  ;;  %v699_v45 = vld [vmem:[#allocation8] sm:$0xff]  ;;  %s519_s22 = sshll.u32 %s516_s21, 4  ;;  %s520_s22 = int_to_ptr.hbm [resolvable:$true] %s519_s22 }
  0x3f   : > { %v347_v23 = vstv %s1157_s5  ;;  %s1207_s19 = sld [smem:[#allocation3 + $0x100]]  ;;  %478 = vmatpush.bf16.msra.mxu1 %v701_v3  ;;  %763 = vmatpush.bf16.msra.mxu3 %v701_v3  ;;  %s505_s15 = scalar_lea.sflag [#allocation5], %s1143_s9 }
  0x40   : > { %v348_v28 = vmul.f32 %v710_v5, %v347_v23  ;;  %v349_v29 = vmul.f32 %v711_v6, %v347_v23  ;;  %v353_v30 = vstv %s1159_s8  ;;  %s1215_s30 = sld [smem:[#allocation3 + $0x180]]  ;;  %v350_v47 = vmul.f32 %v714_v19, %v347_v23  ;;  %s919_s5 = sshra.s32 %s520_s22, 4  ;;  %s920_s5 = int_to_ptr.hbm [resolvable:$true] %s919_s5 }
  0x41   : > { %v354_v32 = vmul.f32 %v718_v10, %v353_v30  ;;  %v355_v33 = vmul.f32 %v719_v11, %v353_v30  ;;  %v363_v34 = vstv %s1164_s23  ;;  %v351_v48 = vmul.f32 %v715_v20, %v347_v23  ;;  %s921_s8 = scalar_lea.hbm %s920_s5, 16  ;;  %p926_p7 = scmp.lt.s32.totalorder %s920_s5, %s1331_s3 }
  0x42   : > { %v364_v36 = vmul.f32 %v726_v12, %v363_v34  ;;  %v365_v37 = vmul.f32 %v727_v13, %v363_v34  ;;  %v373_v38 = vstv %s1177_s25  ;;  %430 = vmatpush.bf16.msra.mxu0 %v704_v22  ;;  %760 = vmatpush.bf16.msra.mxu2 %v704_v22  ;;  %v356_v52 = vmul.f32 %v722_v24, %v353_v30  ;;  %p922_p4 = scmp.ne.s32.totalorder %s920_s5, %s921_s8 }
  0x43   : > { %v358_v41 = vadd.f32 %v354_v32, %v348_v28  ;;  %v359_v42 = vadd.f32 %v355_v33, %v349_v29  ;;  %v374_v43 = vmul.f32 %v734_v17, %v373_v38  ;;  %v274_v44 = vstv %s1192_s10  ;;  %479 = vmatpush.bf16.msra.mxu1 %v700_v27  ;;  %764 = vmatpush.bf16.msra.mxu3 %v700_v27  ;;  %s925_s10 = scalar_lea.hbm %s1331_s3, 32 }
  0x44   : > { %v375_v46 = vmul.f32 %v735_v18, %v373_v38  ;;  %v289_v49 = vstv %s1201_s18  ;;  %v357_v53 = vmul.f32 %v723_v25, %v353_v30  ;;  %v366_v54 = vmul.f32 %v730_v26, %v363_v34  ;;  %p923_p5 = pnand %p922_p4, %p1085_p9  ;;  %p927_p8 = scmp.lt.s32.totalorder %s925_s10, %s921_s8 }
  0x45   : > { %v368_v50 = vadd.f32 %v364_v36, %v358_v41  ;;  %v369_v51 = vadd.f32 %v365_v37, %v359_v42  ;;  %v367_v55 = vmul.f32 %v731_v31, %v363_v34  ;;  %v376_v56 = vmul.f32 %v738_v35, %v373_v38 }
  0x46   : > { %v377_v57 = vmul.f32 %v739_v39, %v373_v38  ;;  %431 = vmatpush.bf16.msra.mxu0 %v703_v40  ;;  %761 = vmatpush.bf16.msra.mxu2 %v703_v40  ;;  %v360_v60 = vadd.f32 %v356_v52, %v350_v47  ;;  %v308_v61 = vstv %s1207_s19  ;;  %v361_v62 = vadd.f32 %v357_v53, %v351_v48  ;;  %p924_p6 = pneg %p923_p5  ;;  %p928_p10 = por %p927_p8, %p926_p7 }
  0x47   : > { %v378_v58 = vadd.f32 %v374_v43, %v368_v50  ;;  %v379_v59 = vadd.f32 %v375_v46, %v369_v51  ;;  %480 = vmatpush.bf16.msra.mxu1 %v699_v45  ;;  %765 = vmatpush.bf16.msra.mxu3 %v699_v45  ;;  %v275_v63 = vmul.f32 %v710_v5, %v274_v44  ;;  %v327_v1 = vstv %s1215_s30 }
  0x48   : > { %v276_v0 = vmul.f32 %v711_v6, %v274_v44  ;;  %v370_v3 = vadd.f32 %v366_v54, %v360_v60  ;;  %v290_v22 = vmul.f32 %v718_v10, %v289_v49  ;;  %v291_v23 = vmul.f32 %v719_v11, %v289_v49  ;;  %p929_p12 = pnand %p928_p10, %p924_p6 }
  0x49   : > { %v382_v2 = vpack.c.bf16 %v379_v59, %v378_v58  ;;  %v371_v27 = vadd.f32 %v367_v55, %v361_v62  ;;  %v309_v28 = vmul.f32 %v726_v12, %v308_v61  ;;  %v310_v29 = vmul.f32 %v727_v13, %v308_v61 }
  0x4a   : > { %v328_v4 = vmul.f32 %v734_v17, %v327_v1  ;;  %v380_v5 = vadd.f32 %v376_v56, %v370_v3  ;;  %v294_v6 = vadd.f32 %v290_v22, %v275_v63  ;;  %v295_v30 = vadd.f32 %v291_v23, %v276_v0 }
  0x4b   : > { %673 = vmatmul.msk.bf16.vlgmr.msra.gmra.mxu0 %vm417_vm0, %v382_v2  ;;  %v329_v10 = vmul.f32 %v735_v18, %v327_v1  ;;  %v381_v7 = vadd.f32 %v377_v57, %v371_v27  ;;  %v277_v11 = vmul.f32 %v714_v19, %v274_v44  ;;  %v278_v12 = vmul.f32 %v715_v20, %v274_v44 }
  0x4c   : > { %v292_v8 = vmul.f32 %v722_v24, %v289_v49  ;;  %v313_v13 = vadd.f32 %v309_v28, %v294_v6  ;;  %v314_v17 = vadd.f32 %v310_v29, %v295_v30  ;;  %v293_v32 = vmul.f32 %v723_v25, %v289_v49 }
  0x4d   : > { %v311_v33 = vmul.f32 %v730_v26, %v308_v61  ;;  %v383_v9 = vpack.c.bf16 %v381_v7, %v380_v5  ;;  %v312_v34 = vmul.f32 %v731_v31, %v308_v61  ;;  %v330_v14 = vmul.f32 %v738_v35, %v327_v1 }
  0x4e   : > { %v296_v18 = vadd.f32 %v292_v8, %v277_v11  ;;  %v332_v19 = vadd.f32 %v328_v4, %v313_v13  ;;  %v333_v20 = vadd.f32 %v329_v10, %v314_v17  ;;  %v297_v36 = vadd.f32 %v293_v32, %v278_v12 }
  0x4f   : > { %v331_v24 = vmul.f32 %v739_v39, %v327_v1  ;;  %674 = vmatmul.msk.bf16.vlgmr.msra.gmra.mxu2 %vm417_vm0, %v383_v9 }
  0x50   : > { %v315_v15 = vadd.f32 %v311_v33, %v296_v18  ;;  %v336_v25 = vpack.c.bf16 %v333_v20, %v332_v19  ;;  %v316_v26 = vadd.f32 %v312_v34, %v297_v36 }
  0x52   : > { %v334_v37 = vadd.f32 %v330_v14, %v315_v15  ;;  %691 = vmatmul.msk.bf16.vlgmr.msra.gmra.mxu1 %vm417_vm0, %v336_v25  ;;  %v335_v16 = vadd.f32 %v331_v24, %v316_v26 }
  0x54   : > { %v337_v31 = vpack.c.bf16 %v335_v16, %v334_v37 }
  0x56   : > { %692 = vmatmul.msk.bf16.vlgmr.msra.gmra.mxu3 %vm417_vm0, %v337_v31 }
  0xc8   : > { %v433_v35 = vpop.f32.mrf.mxu0 }
  0xcf   : > { %v482_v38 = vpop.f32.mrf.mxu1 }
  0xd0   : > { %v435_v41 = vpop.f32.mrf.mxu0  ;;  %v483_v21 = vadd.f32 %v482_v38, %v433_v35 }
  0xd2   : > { %v438_v40 = vpop.f32.mrf.mxu2  ;;  %v492_v44 = vmax.f32 %v483_v21, 0.0 }
  0xd7   : > { %v484_v39 = vpop.f32.mrf.mxu1 }
  0xd8   : > { %v485_v42 = vadd.f32 %v484_v39, %v435_v41 }
  0xd9   : > { %v487_v43 = vpop.f32.mrf.mxu3 }
  0xda   : > { %v493_v45 = vmax.f32 %v485_v42, 0.0  ;;  %v440_v47 = vpop.f32.mrf.mxu2  ;;  %v488_v48 = vadd.f32 %v487_v43, %v438_v40 }
  0xdc   : > { %v743_v46 = vpack.c.bf16 %v493_v45, %v492_v44  ;;  %v494_v51 = vmax.f32 %v488_v48, 0.0 }
  0xde   : > { %744 = vst [vmem:[%s261_s29] sm:$0xff] %v743_v46  }
  0xe1   : > { %v489_v49 = vpop.f32.mrf.mxu3 }
  0xe2   : > { %v490_v50 = vadd.f32 %v489_v49, %v440_v47 }
  0xe4   : > { %v495_v52 = vmax.f32 %v490_v50, 0.0 }
  0xe6   : > { %v748_v53 = vpack.c.bf16 %v495_v52, %v494_v51 }
  0xe8   : > { %757 = vst [vmem:[%s261_s29 + $0x8] sm:$0xff] %v748_v53  }
  0xe9   : > { %932 = shalt.err (!%p929_p12)
}
  0xea   : > { %s1006_s9 = smov 64   ;;  %s1007_s30 = smov 4  }
  0xeb   : > { %783 = dma.vmem_to_hbm [thread:$0]  (%p1085_p9), %s518_s11, 256, %s520_s22, %s505_s15, %s1006_s9, %s1006_s9, %s1007_s30  }
  0xec PF: > { %s534_s24 = sand.u32 1, %s975_s12   ;;  %p793_p13 = pnand %p627_p3, %p1092_p11 }
  0xed   : > { %s535_s6 = scalar_lea.sflag [#allocation5], %s534_s24 }
  0xee   : > { %p794_p0 = pneg %p793_p13 }
  0xf0   : > { %970 = dma.done.wait (%p794_p0), %s535_s6, 256  }
  0xf1   : > { %972 = vsyncadd (%p794_p0), %s535_s6, 4294967040  ;;  %s21_s17 = sadd.s32 1, %s995_s17   ;;  %s1338_s12 = smov %s979_s13 }
  0xf2   : > { %p18_p1 = scmp.ge.s32.totalorder %s21_s17, 4   ;;  %s1339_s13 = smov %s983_s14 }
  0xf3   : > { %s1340_s14 = smov %s1090_s27  ;;  %s1341_s15 = smov %s991_s16 }
  0xf4   : > { %s1342_s16 = smov %s1344_s20  ;;  %20 = sbr.rel (!%p18_p1) target bundleno = 8 (0x8), region = 95 }
  0xf9   :  { %541 = vsyncpa [#allocation4], 1 }
  0xfa   :  { %543 = vsyncpa [#allocation4 + $0x1], 1 }
  0xfb   :  { %544 = vsyncpa [#allocation9], 1 }
  0xfc   :  { %545 = vsyncpa [#allocation5], 1 }
  0xfd   :  { %547 = vsyncpa [#allocation5 + $0x1], 1 }
  0xfe   :  { %548 = vsyncpa [#allocation6], 1 }
  0xff   :  { %550 = vsyncpa [#allocation6 + $0x1], 1 }

</bundles_post_ra>
